<compile_context>
chip_gen: v7x
topology: tpu7x:2x2x1
jax: 0.10.0
libtpu: 0.0.40
codegen_flags: <defaults>
</compile_context>

<pallas_src>
import functools

import jax
import jax.numpy as jnp
from jax.experimental import pallas as pl
from jax.experimental.pallas import tpu as pltpu

LANE = 128
SUBLANE = 8                 # f32 sublane count (accumulator granularity)
CHUNK_ROWS = 1024           # in-kernel sub-chunk (512 KiB f32 per input chunk)
MIN_PALLAS_ELEMS = 1 << 20  # below this, plain jnp is already at roofline

_SUBLANE_BY_ITEMSIZE = {4: 8, 2: 16, 1: 32}


def _chip_defaults():
    """Generation-conditional tiling / sharding defaults."""
    kind = ""
    try:
        kind = jax.devices()[0].device_kind.lower()
    except Exception:
        pass
    if "v7" in kind:
        # 2 TensorCores, ~3.2 TB/s HBM per TC, 64 MiB VMEM per TC: bigger tiles
        # amortise the ~0.35 us per-grid-step cost, shard axis -> both TCs.
        return dict(max_block_rows=16384, num_shards=2,
                    vmem_limit_bytes=56 * 1024 * 1024)
    # v5e / v6e: single TensorCore -> shard axis is just a serial loop, drop it.
    # 32 MiB scoped VMEM covers 2 inputs x 2 buffers x 4 MiB + temporaries.
    return dict(max_block_rows=8192, num_shards=1,
                vmem_limit_bytes=32 * 1024 * 1024)


def _sq_diff_partial_kernel(s_ref, t_ref, out_ref, *, rows, block_rows,
                            chunk_rows, steps_per_shard, steps_total,
                            has_tail, has_overrun):
    p = pl.program_id(0)   # parallel shard axis (TensorCores on v7x)
    i = pl.program_id(1)   # sequential reduction axis
    logical_block = p * steps_per_shard + i

    @pl.when(i == 0)
    def _init():
        out_ref[...] = jnp.zeros_like(out_ref)

    n_chunks = block_rows // chunk_rows

    def block_partial(masked):
        """Sum of (s-t)^2 over this block, folded into an (8,128) f32 vector."""
        def body(c, acc):
            r0 = pl.multiple_of(c * chunk_rows, chunk_rows)
            d = (s_ref[pl.ds(r0, chunk_rows), :].astype(jnp.float32)
                 - t_ref[pl.ds(r0, chunk_rows), :].astype(jnp.float32))
            sq = d * d
            if masked:
                # Zero rows past the true row count (tail overhang and clamped
                # out-of-range shard steps). Only the edge block runs this.
                row0 = logical_block * block_rows + r0
                row_ids = row0 + jax.lax.broadcasted_iota(
                    jnp.int32, (chunk_rows, LANE), 0)
                sq = jnp.where(row_ids < rows, sq, 0.0)
            return acc + sq.reshape(chunk_rows // SUBLANE, SUBLANE,
                                    LANE).sum(axis=0)

        init = jnp.zeros((SUBLANE, LANE), jnp.float32)
        if n_chunks == 1:
            return body(0, init)
        # Unrolled loop keeps live intermediates to a few hundred KiB and gives
        # the LLO scheduler full visibility.
        return jax.lax.fori_loop(0, n_chunks, body, init, unroll=True)

    if not (has_tail or has_overrun):
        out_ref[...] += block_partial(False)
    else:
        mask_start = steps_total - 1 if has_tail else steps_total
        is_edge = logical_block >= mask_start

        @pl.when(jnp.logical_not(is_edge))
        def _interior():
            out_ref[...] += block_partial(False)

        @pl.when(is_edge)
        def _edge():
            out_ref[...] += block_partial(True)


def fea_loss(g_s, g_t, *, max_block_rows=None, num_shards=None,
             vmem_limit_bytes=None, min_pallas_elems=MIN_PALLAS_ELEMS):
    """MSE loss (mean over all elements) between student / teacher features.

    Matches nn.MSELoss(reduce=True, size_average=True)(g_s, g_t.detach()).
    """
    assert g_s.shape == g_t.shape, (g_s.shape, g_t.shape)
    g_t = jax.lax.stop_gradient(g_t)   # detach() — forward-pass semantics

    n_elems = g_s.size
    if n_elems == 0:
        return jnp.float32(jnp.nan)    # torch MSELoss mean over empty -> nan

    defaults = _chip_defaults()
    if max_block_rows is None:
        max_block_rows = defaults["max_block_rows"]
    if num_shards is None:
        num_shards = defaults["num_shards"]
    if vmem_limit_bytes is None:
        vmem_limit_bytes = defaults["vmem_limit_bytes"]

    # Lane-dense alignment respecting the dtype min tile: f32 (8,128),
    # bf16/fp16 (16,128), int8/fp8 (32,128).
    sub_rows = max(
        _SUBLANE_BY_ITEMSIZE.get(jnp.dtype(g_s.dtype).itemsize, 8),
        _SUBLANE_BY_ITEMSIZE.get(jnp.dtype(g_t.dtype).itemsize, 8))
    align = sub_rows * LANE

    s_flat = jnp.ravel(g_s)
    t_flat = jnp.ravel(g_t)
    n_main = (n_elems // align) * align

    # Small-input / unalignable fallback: XLA's fused reduction is already at
    # roofline and pallas_call setup would dominate.
    if n_main == 0 or n_elems < min_pallas_elems:
        d = s_flat.astype(jnp.float32) - t_flat.astype(jnp.float32)
        return jnp.sum(d * d) / jnp.float32(n_elems)

    rows = n_main // LANE                         # multiple of sub_rows
    s2d = s_flat[:n_main].reshape(rows, LANE)     # free reshape, no pad copy
    t2d = t_flat[:n_main].reshape(rows, LANE)

    if rows >= max_block_rows:
        block_rows = max_block_rows
    else:
        block_rows = rows
    chunk_rows = CHUNK_ROWS if block_rows % CHUNK_ROWS == 0 else block_rows
    assert block_rows % sub_rows == 0 and chunk_rows % SUBLANE == 0

    steps_total = pl.cdiv(rows, block_rows)
    num_shards = max(1, min(num_shards, steps_total))
    steps_per_shard = pl.cdiv(steps_total, num_shards)

    has_tail = (rows % block_rows) != 0
    has_overrun = (num_shards * steps_per_shard) != steps_total

    def in_map(p, i):
        b = p * steps_per_shard + i
        if has_overrun:
            # Clamp fully-out-of-range shard steps onto a valid block; their
            # contribution is zeroed by the in-kernel edge mask.
            b = jnp.minimum(b, steps_total - 1)
        return (b, 0)

    kernel = functools.partial(
        _sq_diff_partial_kernel,
        rows=rows,
        block_rows=block_rows,
        chunk_rows=chunk_rows,
        steps_per_shard=steps_per_shard,
        steps_total=steps_total,
        has_tail=has_tail,
        has_overrun=has_overrun,
    )

    bytes_in = rows * LANE * (jnp.dtype(g_s.dtype).itemsize
                              + jnp.dtype(g_t.dtype).itemsize)
    partials = pl.pallas_call(
        kernel,
        out_shape=jax.ShapeDtypeStruct((num_shards, SUBLANE, LANE), jnp.float32),
        grid_spec=pltpu.PrefetchScalarGridSpec(
            num_scalar_prefetch=0,
            grid=(num_shards, steps_per_shard),
            in_specs=[
                pl.BlockSpec((block_rows, LANE), in_map),
                pl.BlockSpec((block_rows, LANE), in_map),
            ],
            out_specs=pl.BlockSpec((None, SUBLANE, LANE), lambda p, i: (p, 0, 0)),
        ),
        compiler_params=pltpu.CompilerParams(
            dimension_semantics=("parallel", "arbitrary"),
            vmem_limit_bytes=vmem_limit_bytes,
        ),
        cost_estimate=pl.CostEstimate(
            flops=3 * rows * LANE,
            transcendentals=0,
            bytes_accessed=bytes_in + num_shards * SUBLANE * LANE * 4,
        ),
    )(s2d, t2d)

    total = jnp.sum(partials)

    # Unaligned remainder (< sub_rows*128 elements): plain jnp, no HBM re-copy
    # of the full tensors.
    if n_main != n_elems:
        dr = (s_flat[n_main:].astype(jnp.float32)
              - t_flat[n_main:].astype(jnp.float32))
        total = total + jnp.sum(dr * dr)

    return total / jnp.float32(n_elems)


if __name__ == "__main__":
    key = jax.random.PRNGKey(0)
    k1, k2, k3, k4 = jax.random.split(key, 4)

    def ref_mse(a, b):
        return jnp.mean((a.astype(jnp.float32) - b.astype(jnp.float32)) ** 2)

    # 1) Small NCHW feature maps (batch=2, channels=4, spatial=16x16), forced
    #    through the Pallas kernel (single block, no tail).
    g_s = jax.random.normal(k1, (2, 4, 16, 16), dtype=jnp.float32)
    g_t = jax.random.normal(k2, (2, 4, 16, 16), dtype=jnp.float32)
    loss = fea_loss(g_s, g_t, min_pallas_elems=0)
    jax.block_until_ready(loss)
    assert jnp.allclose(loss, ref_mse(g_s, g_t), rtol=1e-5, atol=1e-6)

    # 2) Non-lane-aligned element count: exercises the pure-jnp remainder path.
    g_s2 = jax.random.normal(k3, (2, 3, 7, 5), dtype=jnp.float32)
    g_t2 = jax.random.normal(k4, (2, 3, 7, 5), dtype=jnp.float32)
    loss2 = fea_loss(g_s2, g_t2)
    jax.block_until_ready(loss2)
    assert jnp.allclose(loss2, ref_mse(g_s2, g_t2), rtol=1e-5, atol=1e-6)

    # 3) Multi-step grid: tail-masked edge block (3a) and clamped shard
    #    overrun (3b) with an explicit 2-way shard axis.
    g_s3 = jax.random.normal(k1, (3, 4, 16, 16), dtype=jnp.float32)
    g_t3 = jax.random.normal(k2, (3, 4, 16, 16), dtype=jnp.float32)
    ref3 = ref_mse(g_s3, g_t3)
    loss3a = fea_loss(g_s3, g_t3, max_block_rows=16, num_shards=2,
                      min_pallas_elems=0)
    loss3b = fea_loss(g_s3, g_t3, max_block_rows=8, num_shards=2,
                      min_pallas_elems=0)
    jax.block_until_ready((loss3a, loss3b))
    assert jnp.allclose(loss3a, ref3, rtol=1e-5, atol=1e-6)
    assert jnp.allclose(loss3b, ref3, rtol=1e-5, atol=1e-6)

    # 4) bf16 features: native pass-through, (16,128)-aligned, f32 accumulation.
    g_s4 = jax.random.normal(k3, (2, 8, 32, 32), dtype=jnp.bfloat16)
    g_t4 = jax.random.normal(k4, (2, 8, 32, 32), dtype=jnp.bfloat16)
    loss4 = fea_loss(g_s4, g_t4, min_pallas_elems=0)
    jax.block_until_ready(loss4)
    assert jnp.allclose(loss4, ref_mse(g_s4, g_t4), rtol=1e-4, atol=1e-6)

    # 5) Multi-chunk in-kernel fori_loop path (block_rows=2048, chunk=1024).
    g_s5 = jax.random.normal(k1, (2, 16, 128, 128), dtype=jnp.float32)
    g_t5 = jax.random.normal(k2, (2, 16, 128, 128), dtype=jnp.float32)
    loss5 = fea_loss(g_s5, g_t5, max_block_rows=2048, min_pallas_elems=0)
    jax.block_until_ready(loss5)
    assert jnp.allclose(loss5, ref_mse(g_s5, g_t5), rtol=1e-4, atol=1e-6)

    print("KERNEL_OK")
</pallas_src>

<mosaic_0001>
module attributes {stable_mosaic.version = 11 : i64} {
  func.func @_sq_diff_partial_kernel(%arg0: i32, %arg1: i32, %arg2: memref<16x128xf32, #tpu.memory_space<vmem>>, %arg3: memref<16x128xf32, #tpu.memory_space<vmem>>, %arg4: memref<1x8x128xf32, #tpu.memory_space<vmem>>) attributes {dimension_semantics = [#tpu.dimension_semantics<parallel>, #tpu.dimension_semantics<arbitrary>], iteration_bounds = array<i64: 1, 1>, scalar_prefetch = 0 : i64, scratch_operands = 0 : i64, tpu.core_type = #tpu.core_type<tc>, window_params = [{transform_indices = @transform_0, window_bounds = array<i64: 16, 128>}, {transform_indices = @transform_1, window_bounds = array<i64: 16, 128>}, {transform_indices = @transform_2, window_bounds = array<i64: 1, 8, 128>}]} {
    %c0_i32 = arith.constant 0 : i32
    %0 = arith.cmpi eq, %arg1, %c0_i32 : i32
    %1 = arith.extui %0 : i1 to i32
    %c0_i32_0 = arith.constant 0 : i32
    %2 = arith.cmpi ne, %1, %c0_i32_0 : i32
    scf.if %2 {
      %cst_10 = arith.constant 0.000000e+00 : f32
      %20 = vector.broadcast %cst_10 : f32 to vector<8x128xf32>
      %c0_11 = arith.constant 0 : index
      %c0_12 = arith.constant 0 : index
      %c0_13 = arith.constant 0 : index
      %21 = vector.load %arg4[%c0_11, %c0_12, %c0_13] : memref<1x8x128xf32, #tpu.memory_space<vmem>>, vector<1x8x128xf32>
      %22 = vector.shape_cast %21 : vector<1x8x128xf32> to vector<8x128xf32>
      %23 = vector.shape_cast %20 : vector<8x128xf32> to vector<1x8x128xf32>
      tpu.vector_store %arg4[%c0_11, %c0_12, %c0_13], %23 {strides = array<i32>} : memref<1x8x128xf32, #tpu.memory_space<vmem>>, vector<1x8x128xf32>,
    } else {
    }
    %c0 = arith.constant 0 : index
    %c0_1 = arith.constant 0 : index
    %c0_2 = arith.constant 0 : index
    %3 = vector.load %arg4[%c0, %c0_1, %c0_2] : memref<1x8x128xf32, #tpu.memory_space<vmem>>, vector<1x8x128xf32>
    %4 = vector.shape_cast %3 : vector<1x8x128xf32> to vector<8x128xf32>
    %cst = arith.constant 0.000000e+00 : f32
    %5 = vector.broadcast %cst : f32 to vector<8x128xf32>
    %c0_i32_3 = arith.constant 0 : i32
    %6 = tpu.assume_multiple %c0_i32_3, 16 : i32
    %7 = arith.index_cast %6 : i32 to index
    %c0_4 = arith.constant 0 : index
    %8 = vector.load %arg2[%7, %c0_4] : memref<16x128xf32, #tpu.memory_space<vmem>>, vector<16x128xf32>
    %9 = arith.index_cast %6 : i32 to index
    %c0_5 = arith.constant 0 : index
    %10 = vector.load %arg3[%9, %c0_5] : memref<16x128xf32, #tpu.memory_space<vmem>>, vector<16x128xf32>
    %11 = arith.subf %8, %10 : vector<16x128xf32>
    %12 = arith.mulf %11, %11 : vector<16x128xf32>
    %13 = vector.shape_cast %12 : vector<16x128xf32> to vector<2x8x128xf32>
    %cst_6 = arith.constant dense<0.000000e+00> : vector<8x128xf32>
    %14 = vector.multi_reduction <add>, %13, %cst_6 [0] : vector<2x8x128xf32> to vector<8x128xf32>
    %15 = arith.addf %5, %14 : vector<8x128xf32>
    %16 = arith.addf %4, %15 : vector<8x128xf32>
    %c0_7 = arith.constant 0 : index
    %c0_8 = arith.constant 0 : index
    %c0_9 = arith.constant 0 : index
    %17 = vector.load %arg4[%c0_7, %c0_8, %c0_9] : memref<1x8x128xf32, #tpu.memory_space<vmem>>, vector<1x8x128xf32>
    %18 = vector.shape_cast %17 : vector<1x8x128xf32> to vector<8x128xf32>
    %19 = vector.shape_cast %16 : vector<8x128xf32> to vector<1x8x128xf32>
    tpu.vector_store %arg4[%c0_7, %c0_8, %c0_9], %19 {strides = array<i32>} : memref<1x8x128xf32, #tpu.memory_space<vmem>>, vector<1x8x128xf32>,
    return
  }
  func.func @transform_0(%arg0: i32, %arg1: i32) -> (i32, i32) {
    %c1_i32 = arith.constant 1 : i32
    %0 = arith.muli %arg0, %c1_i32 : i32
    %1 = arith.addi %0, %arg1 : i32
    %c0_i32 = arith.constant 0 : i32
    %c0_i32_0 = arith.constant 0 : i32
    return %1, %c0_i32 : i32, i32
  }
  func.func @transform_1(%arg0: i32, %arg1: i32) -> (i32, i32) {
    %c1_i32 = arith.constant 1 : i32
    %0 = arith.muli %arg0, %c1_i32 : i32
    %1 = arith.addi %0, %arg1 : i32
    %c0_i32 = arith.constant 0 : i32
    %c0_i32_0 = arith.constant 0 : i32
    return %1, %c0_i32 : i32, i32
  }
  func.func @transform_2(%arg0: i32, %arg1: i32) -> (i32, i32, i32) {
    %c0_i32 = arith.constant 0 : i32
    %c0_i32_0 = arith.constant 0 : i32
    %c0_i32_1 = arith.constant 0 : i32
    return %arg0, %c0_i32, %c0_i32_0 : i32, i32, i32
  }
}

</mosaic_0001>

<bundles_post_ra>
// kernel: tpu_custom_call.1
= control target key start
LH: loop header
LB: loop body
LE: loop exit
PB: predicated region body
PF: predicated region fallthrough
CT: control target
= control target key end

     0   :  { %7 = vsyncpa [#allocation3], 0  ;;  %s220_s0 = inlined_call_operand.hbm [shape: f32[16,128], index: 0, kind: input, shape index: {}]   ;;  %s221_s1 = inlined_call_operand.hbm [shape: f32[16,128], index: 1, kind: input, shape index: {}]   ;;  %s222_s2 = inlined_call_operand.hbm [shape: f32[1,8,128], index: 2, kind: output, shape index: {}]  }
   0x1   :  { %8 = vsyncpa [#allocation6], 0 }
   0x2   :  { %9 = vsyncpa [#allocation4], 0  ;;  %s164_s9 = smov [#allocation2]   ;;  %s92_s13 = scalar_lea.hbm %s220_s0, 256 }
   0x3   :  { %s19_s10 = sshll.u32 %s164_s9, 4  ;;  %p93_p0 = scmp.ne.s32.totalorder %s220_s0, %s92_s13  ;;  %s20_s10 = int_to_ptr.vmem [resolvable:$true] %s19_s10 }
   0x4   :  { %p96_p1 = scmp.lt.u32.totalorder %s92_s13, %s220_s0 }
   0x6   :  { %p98_p2 = pnand %p96_p1, %p93_p0 }
   0x8   :  { %101 = shalt.err (!%p98_p2)
}
   0x9   :  { %s102_s18 = scalar_lea.vmem %s20_s10, 256  ;;  %p107_p4 = scmp.lt.s32.totalorder %s20_s10, %s20_s10 }
   0xa   :  { %p103_p3 = scmp.ne.s32.totalorder %s20_s10, %s102_s18  ;;  %p108_p5 = scmp.lt.s32.totalorder %s102_s18, %s102_s18 }
   0xc   :  { %p109_p6 = por %p108_p5, %p107_p4 }
   0xe   :  { %p110_p7 = pnand %p109_p6, %p103_p3 }
  0x10   :  { %113 = shalt.err (!%p110_p7)
}
  0x11   :  { %s165_s19 = smov 128   ;;  %s166_s20 = smov 8  }
  0x12   :  { %25 = dma.hbm_to_vmem [thread:$0]  %s220_s0, 256, %s20_s10, [#allocation3], %s165_s19, %s165_s19, %s166_s20  }
  0x13   :  { %s167_s23 = smov [#allocation5]   ;;  %s114_s27 = scalar_lea.hbm %s221_s1, 256 }
  0x14   :  { %s35_s24 = sshll.u32 %s167_s23, 4  ;;  %p115_p8 = scmp.ne.s32.totalorder %s221_s1, %s114_s27  ;;  %s36_s24 = int_to_ptr.vmem [resolvable:$true] %s35_s24 }
  0x15   :  { %p118_p9 = scmp.lt.u32.totalorder %s114_s27, %s221_s1 }
  0x17   :  { %p120_p10 = pnand %p118_p9, %p115_p8 }
  0x19   :  { %123 = shalt.err (!%p120_p10)
}
  0x1a   :  { %s124_s4 = scalar_lea.vmem %s36_s24, 256  ;;  %p129_p12 = scmp.lt.s32.totalorder %s36_s24, %s36_s24 }
  0x1b   :  { %p125_p11 = scmp.ne.s32.totalorder %s36_s24, %s124_s4  ;;  %p130_p13 = scmp.lt.s32.totalorder %s124_s4, %s124_s4 }
  0x1d   :  { %p131_p0 = por %p130_p13, %p129_p12 }
  0x1f   :  { %p132_p1 = pnand %p131_p0, %p125_p11 }
  0x21   :  { %135 = shalt.err (!%p132_p1)
}
  0x22   :  { %41 = dma.hbm_to_vmem [thread:$0]  %s221_s1, 256, %s36_s24, [#allocation6], %s165_s19, %s165_s19, %s166_s20  }
  0x23   :  { %158 = dma.done.wait [#allocation3], 256  }
  0x24   :  { %159 = vsyncadd [#allocation3], 4294967040 }
  0x25   :  { %160 = dma.done.wait [#allocation6], 256  }
  0x26   :  { %161 = vsyncadd [#allocation6], 4294967040  ;;  %v58_v0 = vld [vmem:[#allocation2] sm:$0xff]  ;;  %v59_v1 = vld [vmem:[#allocation2 + $0x8] sm:$0xff]  ;;  %s168_s6 = smov [#allocation7]  }
  0x27   :  { %v60_v2 = vld [vmem:[#allocation5] sm:$0xff]  ;;  %v61_v3 = vld [vmem:[#allocation5 + $0x8] sm:$0xff]  ;;  %s76_s7 = sshll.u32 %s168_s6, 4  ;;  %s77_s7 = int_to_ptr.vmem [resolvable:$true] %s76_s7 }
  0x28   :  { %v62_v4 = vsub.f32 %v58_v0, %v60_v2  ;;  %v63_v5 = vsub.f32 %v59_v1, %v61_v3  ;;  %s136_s8 = scalar_lea.vmem %s77_s7, 128  ;;  %p141_p3 = scmp.lt.s32.totalorder %s77_s7, %s77_s7 }
  0x29   :  { %p137_p2 = scmp.ne.s32.totalorder %s77_s7, %s136_s8  ;;  %p142_p4 = scmp.lt.s32.totalorder %s136_s8, %s136_s8 }
  0x2a   :  { %v64_v6 = vmul.f32 %v62_v4, %v62_v4  ;;  %v65_v7 = vmul.f32 %v63_v5, %v63_v5 }
  0x2b   :  { %p143_p5 = por %p142_p4, %p141_p3 }
  0x2c   :  { %v66_v8 = vadd.f32 %v65_v7, %v64_v6 }
  0x2d   :  { %p144_p6 = pnand %p143_p5, %p137_p2 }
  0x2e   :  { %69 = vst [vmem:[#allocation7] sm:$0xff] %v66_v8 }
  0x2f   :  { %147 = shalt.err (!%p144_p6)
}
  0x30   :  { %s148_s10 = scalar_lea.hbm %s222_s2, 128 }
  0x31   :  { %p149_p7 = scmp.ne.s32.totalorder %s222_s2, %s148_s10  ;;  %p152_p8 = scmp.lt.u32.totalorder %s148_s10, %s222_s2 }
  0x33   :  { %p154_p9 = pnand %p152_p8, %p149_p7 }
  0x35   :  { %157 = shalt.err (!%p154_p9)
}
  0x36   :  { %79 = dma.vmem_to_hbm [thread:$0]  %s77_s7, 128, %s222_s2, [#allocation4]  }
  0x37   :  { %162 = dma.done.wait [#allocation4], 128  }
  0x38   :  { %163 = vsyncadd [#allocation4], 4294967168 }
  0x39   :  { %83 = vsyncpa [#allocation3], 1 }
  0x3a   :  { %84 = vsyncpa [#allocation6], 1 }
  0x3b   :  { %85 = vsyncpa [#allocation4], 1 }

</bundles_post_ra>
